<compile_context>
chip_gen: v6e
topology: v6e:2x2x1
jax: 0.10.0
libtpu: 0.0.40
codegen_flags: <defaults>
</compile_context>

<pallas_src>
import functools
import math
from typing import NamedTuple, Optional

import jax
import jax.numpy as jnp
from jax.experimental import pallas as pl
from jax.experimental.pallas import tpu as pltpu

LANE = 128
SUBLANE = 8


def _round_up(x, m):
    return ((x + m - 1) // m) * m


def _pick_tile(size, cap, unit):
    """Largest multiple of `unit` that divides `size` (itself a multiple of
    `unit`) and is <= cap.  Picking a divisor avoids padding beyond the
    lane/sublane minimum."""
    if size <= cap:
        return size
    q = size // unit
    d = max(1, cap // unit)
    while d > 1 and q % d != 0:
        d -= 1
    return d * unit


def _tpu_generation():
    try:
        kind = jax.devices()[0].device_kind.lower()
    except Exception:
        return "unknown"
    if "v7" in kind or "7x" in kind:
        return "v7x"
    if "v6" in kind:
        return "v6e"
    if "v5" in kind:
        return "v5e"
    return "unknown"


# --------------------------------------------------------------------------
# Kernels
# --------------------------------------------------------------------------
def _linear_kernel(x_ref, w_ref, b_ref, o_ref, *, activation):
    """y = x @ W (+ b, ReLU).  The (tm, tn) output block is K-invariant
    (resident in VMEM), so we accumulate directly into it and run the
    bias/ReLU epilogue once on the final K step."""
    k = pl.program_id(2)

    @pl.when(k == 0)
    def _():
        o_ref[...] = jnp.zeros_like(o_ref)

    o_ref[...] += jnp.dot(x_ref[...], w_ref[...],
                          preferred_element_type=jnp.float32)

    @pl.when(k == pl.num_programs(2) - 1)
    def _():
        y = o_ref[...] + b_ref[...]
        if activation:
            y = jnp.maximum(y, 0.0)
        o_ref[...] = y


def _linear_ln_kernel(x_ref, w_ref, b_ref, g_ref, beta_ref, o_ref,
                      *, activation, eps, out_valid):
    """Linear + LayerNorm + ReLU.  N (feature) axis is untiled so row
    statistics are exact; output block is K-resident and doubles as the
    accumulator."""
    k = pl.program_id(1)

    @pl.when(k == 0)
    def _():
        o_ref[...] = jnp.zeros_like(o_ref)

    o_ref[...] += jnp.dot(x_ref[...], w_ref[...],
                          preferred_element_type=jnp.float32)

    @pl.when(k == pl.num_programs(1) - 1)
    def _():
        y = o_ref[...] + b_ref[...]
        n_pad = y.shape[-1]
        inv_n = 1.0 / float(out_valid)
        # Padded feature columns of y are exactly zero (zero-padded W and b),
        # so the sum already covers only valid lanes; divide by the true Out.
        mean = jnp.sum(y, axis=-1, keepdims=True) * inv_n
        diff = y - mean
        if out_valid != n_pad:
            # Keep the numerically-stable two-pass form; mask only the padded
            # lanes so they do not pollute the variance.
            col = jax.lax.broadcasted_iota(jnp.int32, y.shape, 1)
            diff = jnp.where(col < out_valid, diff, 0.0)
        var = jnp.sum(diff * diff, axis=-1, keepdims=True) * inv_n
        yn = diff * jax.lax.rsqrt(var + eps)
        yn = yn * g_ref[...] + beta_ref[...]
        if activation:
            yn = jnp.maximum(yn, 0.0)
        o_ref[...] = yn


# --------------------------------------------------------------------------
# Parameter preparation (padding hoisted out of the per-call path)
# --------------------------------------------------------------------------
class LinearParams(NamedTuple):
    w: jax.Array                      # (Kp, Np) zero-padded, f32
    b: jax.Array                      # (1, Np)
    gamma: Optional[jax.Array]        # (1, Np) or None
    beta: Optional[jax.Array]         # (1, Np) or None
    in_features: int
    out_features: int


def make_params(w, b, gamma=None, beta=None):
    """Pad parameters to lane-aligned shapes ONCE (not per forward call)."""
    In, Out = w.shape
    Kp = _round_up(In, LANE)
    Np = _round_up(Out, LANE)
    wp = w if (Kp == In and Np == Out) else jnp.pad(
        w, ((0, Kp - In), (0, Np - Out)))
    bp = (b if Np == Out else jnp.pad(b, (0, Np - Out))).reshape(1, Np)
    gp = bep = None
    if gamma is not None:
        gp = (gamma if Np == Out else jnp.pad(gamma, (0, Np - Out))).reshape(1, Np)
        bep = (beta if Np == Out else jnp.pad(beta, (0, Np - Out))).reshape(1, Np)
    return LinearParams(wp, bp, gp, bep, In, Out)


# --------------------------------------------------------------------------
# Forward
# --------------------------------------------------------------------------
def linear_layer_forward(x, params: LinearParams, *, layer_norm=False,
                         activation=True, eps=1e-5):
    """Forward pass of Linear_Layer (eval mode).  x: [B, In] float32."""
    assert x.dtype == jnp.float32, "tiling assumes f32 operands (8,128 tiles)"
    B, In = x.shape
    assert In == params.in_features
    Out = params.out_features
    Kp, Np = params.w.shape

    gen = _tpu_generation()
    if gen in ("v5e", "v6e"):
        # 128 MiB VMEM, lower HBM BW: go large to amortize per-step overhead.
        tm_cap, tk_cap, tn_cap = 512, 1024, 512
        vmem_limit = 64 * 1024 * 1024
        ln_budget = 96 * 1024 * 1024
    else:
        # v7x (64 MiB VMEM, ~3.2 TB/s) and unknown: smaller tiles, headroom.
        tm_cap, tk_cap, tn_cap = 256, 512, 512
        vmem_limit = 48 * 1024 * 1024
        ln_budget = 40 * 1024 * 1024

    Mp = _round_up(B, SUBLANE)
    flops = 2 * Mp * Kp * Np

    if layer_norm:
        # v7x has 2 TensorCores: at small batch split M into two tiles so
        # neither core idles (no effect on v5e/v6e: single TC).
        if gen == "v7x" and B >= 16 and Mp <= tm_cap:
            tm = _round_up(-(-B // 2), SUBLANE)
            Mp = 2 * tm
        else:
            tm = _pick_tile(Mp, tm_cap, SUBLANE)
        tk = _pick_tile(Kp, tk_cap, LANE)

        # Shrink tiles until double-buffered x/W/out blocks + params fit the
        # per-generation VMEM budget (N stays untiled for exact row stats).
        def _fit(tm_, tk_):
            return 4 * (2 * tm_ * tk_ + 2 * tk_ * Np + 2 * tm_ * Np + 6 * Np)

        while _fit(tm, tk) > ln_budget and (tk > LANE or tm > SUBLANE):
            if tk >= tm and tk > LANE:
                tk = _pick_tile(Kp, max(LANE, tk // 2), LANE)
            else:
                tm = _pick_tile(Mp, max(SUBLANE, tm // 2), SUBLANE)

        xp = x if (Mp == B and Kp == In) else jnp.pad(
            x, ((0, Mp - B), (0, Kp - In)))
        grid = (Mp // tm, Kp // tk)
        bytes_accessed = 4 * (Mp * Kp + (Mp // tm) * Kp * Np + Mp * Np)
        kernel = functools.partial(_linear_ln_kernel, activation=activation,
                                   eps=eps, out_valid=Out)
        out_p = pl.pallas_call(
            kernel,
            out_shape=jax.ShapeDtypeStruct((Mp, Np), jnp.float32),
            grid_spec=pltpu.PrefetchScalarGridSpec(
                num_scalar_prefetch=0,
                grid=grid,
                in_specs=[
                    pl.BlockSpec((tm, tk), lambda i, k: (i, k)),
                    pl.BlockSpec((tk, Np), lambda i, k: (k, 0)),
                    # bias / gamma / beta stay resident (same block every step)
                    pl.BlockSpec((1, Np), lambda i, k: (0, 0)),
                    pl.BlockSpec((1, Np), lambda i, k: (0, 0)),
                    pl.BlockSpec((1, Np), lambda i, k: (0, 0)),
                ],
                out_specs=pl.BlockSpec((tm, Np), lambda i, k: (i, 0)),
            ),
            compiler_params=pltpu.CompilerParams(
                dimension_semantics=("parallel", "arbitrary"),
                vmem_limit_bytes=vmem_limit,
            ),
            cost_estimate=pl.CostEstimate(
                flops=flops, transcendentals=Mp,
                bytes_accessed=bytes_accessed),
        )(xp, params.w, params.b, params.gamma, params.beta)
    else:
        tm = _pick_tile(Mp, tm_cap, SUBLANE)
        tk = _pick_tile(Kp, tk_cap, LANE)
        tn = _pick_tile(Np, tn_cap, LANE)
        xp = x if (Mp == B and Kp == In) else jnp.pad(
            x, ((0, Mp - B), (0, Kp - In)))
        grid = (Mp // tm, Np // tn, Kp // tk)
        bytes_accessed = 4 * ((Np // tn) * Mp * Kp
                              + (Mp // tm) * Kp * Np + Mp * Np)
        kernel = functools.partial(_linear_kernel, activation=activation)
        out_p = pl.pallas_call(
            kernel,
            out_shape=jax.ShapeDtypeStruct((Mp, Np), jnp.float32),
            grid_spec=pltpu.PrefetchScalarGridSpec(
                num_scalar_prefetch=0,
                grid=grid,
                in_specs=[
                    pl.BlockSpec((tm, tk), lambda i, j, k: (i, k)),
                    pl.BlockSpec((tk, tn), lambda i, j, k: (k, j)),
                    # bias stays resident across M / K grid steps
                    pl.BlockSpec((1, tn), lambda i, j, k: (0, j)),
                ],
                out_specs=pl.BlockSpec((tm, tn), lambda i, j, k: (i, j)),
            ),
            compiler_params=pltpu.CompilerParams(
                dimension_semantics=("parallel", "parallel", "arbitrary"),
                vmem_limit_bytes=vmem_limit,
            ),
            cost_estimate=pl.CostEstimate(
                flops=flops, transcendentals=0,
                bytes_accessed=bytes_accessed),
        )(xp, params.w, params.b)

    return out_p[:B, :Out]


# --------------------------------------------------------------------------
# Pure-JAX reference
# --------------------------------------------------------------------------
def _ref_linear(x, w, b, gamma=None, beta=None, *, layer_norm=False,
                activation=True, eps=1e-5):
    y = x @ w + b
    if layer_norm:
        mu = y.mean(-1, keepdims=True)
        va = ((y - mu) ** 2).mean(-1, keepdims=True)
        y = (y - mu) / jnp.sqrt(va + eps) * gamma + beta
    if activation:
        y = jnp.maximum(y, 0.0)
    return y


if __name__ == "__main__":
    key = jax.random.PRNGKey(0)
    k_x, k_w, k_b, k_x2, k_w2, k_b2, k_g2, k_be2 = jax.random.split(key, 8)

    # ---- small shapes consistent with an MLP layer (default config) ----
    B, In, Out = 8, 32, 64
    x = jax.random.normal(k_x, (B, In), dtype=jnp.float32)
    bound = 1.0 / math.sqrt(In)
    w = jax.random.uniform(k_w, (In, Out), minval=-bound, maxval=bound,
                           dtype=jnp.float32)
    b = jax.random.uniform(k_b, (Out,), minval=-bound, maxval=bound,
                           dtype=jnp.float32)
    gamma = jnp.ones((Out,), jnp.float32)
    beta = jnp.zeros((Out,), jnp.float32)

    # Parameters are padded once, outside the per-call path.
    params = make_params(w, b)
    params_ln = make_params(w, b, gamma, beta)

    # Default config: linear + ReLU
    out = jax.block_until_ready(
        linear_layer_forward(x, params, activation=True))
    ref = _ref_linear(x, w, b, activation=True)
    assert jnp.allclose(out, ref, atol=1e-5, rtol=1e-5)

    # layer_norm=True variant: linear + LayerNorm + ReLU
    out_ln = jax.block_until_ready(
        linear_layer_forward(x, params_ln, layer_norm=True, activation=True))
    ref_ln = _ref_linear(x, w, b, gamma, beta, layer_norm=True,
                         activation=True)
    assert jnp.allclose(out_ln, ref_ln, atol=1e-4, rtol=1e-4)

    # ---- non-aligned shapes: exercises K-accumulation + minimal 128-padding ----
    B2, In2, Out2 = 24, 600, 192
    x2 = jax.random.normal(k_x2, (B2, In2), dtype=jnp.float32)
    bound2 = 1.0 / math.sqrt(In2)
    w2 = jax.random.uniform(k_w2, (In2, Out2), minval=-bound2, maxval=bound2,
                            dtype=jnp.float32)
    b2 = jax.random.uniform(k_b2, (Out2,), minval=-bound2, maxval=bound2,
                            dtype=jnp.float32)
    gamma2 = jax.random.uniform(k_g2, (Out2,), minval=0.5, maxval=1.5,
                                dtype=jnp.float32)
    beta2 = jax.random.uniform(k_be2, (Out2,), minval=-0.5, maxval=0.5,
                               dtype=jnp.float32)

    params2 = make_params(w2, b2)
    params2_ln = make_params(w2, b2, gamma2, beta2)

    out2 = jax.block_until_ready(
        linear_layer_forward(x2, params2, activation=True))
    ref2 = _ref_linear(x2, w2, b2, activation=True)
    assert jnp.allclose(out2, ref2, atol=1e-4, rtol=1e-4)

    out2_ln = jax.block_until_ready(
        linear_layer_forward(x2, params2_ln, layer_norm=True, activation=True))
    ref2_ln = _ref_linear(x2, w2, b2, gamma2, beta2, layer_norm=True,
                          activation=True)
    assert jnp.allclose(out2_ln, ref2_ln, atol=1e-4, rtol=1e-4)

    print("KERNEL_OK")
</pallas_src>

<mosaic_0001>
module attributes {stable_mosaic.version = 11 : i64} {
  func.func @_linear_kernel(%arg0: i32, %arg1: i32, %arg2: i32, %arg3: memref<8x128xf32, #tpu.memory_space<vmem>>, %arg4: memref<128x128xf32, #tpu.memory_space<vmem>>, %arg5: memref<1x128xf32, #tpu.memory_space<vmem>>, %arg6: memref<8x128xf32, #tpu.memory_space<vmem>>) attributes {dimension_semantics = [#tpu.dimension_semantics<parallel>, #tpu.dimension_semantics<parallel>, #tpu.dimension_semantics<arbitrary>], iteration_bounds = array<i64: 1, 1, 1>, scalar_prefetch = 0 : i64, scratch_operands = 0 : i64, tpu.core_type = #tpu.core_type<tc>, window_params = [{transform_indices = @transform_0, window_bounds = array<i64: 8, 128>}, {transform_indices = @transform_1, window_bounds = array<i64: 128, 128>}, {transform_indices = @transform_2, window_bounds = array<i64: 1, 128>}, {transform_indices = @transform_3, window_bounds = array<i64: 8, 128>}]} {
    %c0_i32 = arith.constant 0 : i32
    %0 = arith.cmpi eq, %arg2, %c0_i32 : i32
    %1 = arith.extui %0 : i1 to i32
    %c0_i32_0 = arith.constant 0 : i32
    %2 = arith.cmpi ne, %1, %c0_i32_0 : i32
    scf.if %2 {
      %cst_10 = arith.constant 0.000000e+00 : f32
      %12 = vector.broadcast %cst_10 : f32 to vector<8x128xf32>
      %c0_11 = arith.constant 0 : index
      %c0_12 = arith.constant 0 : index
      %13 = vector.load %arg6[%c0_11, %c0_12] : memref<8x128xf32, #tpu.memory_space<vmem>>, vector<8x128xf32>
      tpu.vector_store %arg6[%c0_11, %c0_12], %12 {strides = array<i32>} : memref<8x128xf32, #tpu.memory_space<vmem>>, vector<8x128xf32>,
    } else {
    }
    %c0 = arith.constant 0 : index
    %c0_1 = arith.constant 0 : index
    %3 = vector.load %arg6[%c0, %c0_1] : memref<8x128xf32, #tpu.memory_space<vmem>>, vector<8x128xf32>
    %c0_2 = arith.constant 0 : index
    %c0_3 = arith.constant 0 : index
    %4 = vector.load %arg3[%c0_2, %c0_3] : memref<8x128xf32, #tpu.memory_space<vmem>>, vector<8x128xf32>
    %c0_4 = arith.constant 0 : index
    %c0_5 = arith.constant 0 : index
    %5 = vector.load %arg4[%c0_4, %c0_5] : memref<128x128xf32, #tpu.memory_space<vmem>>, vector<128x128xf32>
    %cst = arith.constant dense<0.000000e+00> : vector<8x128xf32>
    %6 = tpu.matmul %4, %5, %cst {dimension_numbers = #tpu.dot_dimension_numbers<[1], [0], [0], [1], [0, 0, 1, 1], [], []>} : vector<8x128xf32>, vector<128x128xf32>, vector<8x128xf32> -> vector<8x128xf32>
    %7 = arith.addf %3, %6 : vector<8x128xf32>
    %c0_6 = arith.constant 0 : index
    %c0_7 = arith.constant 0 : index
    %8 = vector.load %arg6[%c0_6, %c0_7] : memref<8x128xf32, #tpu.memory_space<vmem>>, vector<8x128xf32>
    tpu.vector_store %arg6[%c0_6, %c0_7], %7 {strides = array<i32>} : memref<8x128xf32, #tpu.memory_space<vmem>>, vector<8x128xf32>,
    %c0_i32_8 = arith.constant 0 : i32
    %9 = arith.cmpi eq, %arg2, %c0_i32_8 : i32
    %10 = arith.extui %9 : i1 to i32
    %c0_i32_9 = arith.constant 0 : i32
    %11 = arith.cmpi ne, %10, %c0_i32_9 : i32
    scf.if %11 {
      %c0_10 = arith.constant 0 : index
      %c0_11 = arith.constant 0 : index
      %12 = vector.load %arg6[%c0_10, %c0_11] : memref<8x128xf32, #tpu.memory_space<vmem>>, vector<8x128xf32>
      %c0_12 = arith.constant 0 : index
      %c0_13 = arith.constant 0 : index
      %13 = vector.load %arg5[%c0_12, %c0_13] : memref<1x128xf32, #tpu.memory_space<vmem>>, vector<1x128xf32>
      %14 = vector.broadcast %13 : vector<1x128xf32> to vector<8x128xf32>
      %15 = arith.addf %12, %14 : vector<8x128xf32>
      %cst_14 = arith.constant 0.000000e+00 : f32
      %16 = vector.broadcast %cst_14 : f32 to vector<8x128xf32>
      %17 = arith.maximumf %15, %16 : vector<8x128xf32>
      %c0_15 = arith.constant 0 : index
      %c0_16 = arith.constant 0 : index
      %18 = vector.load %arg6[%c0_15, %c0_16] : memref<8x128xf32, #tpu.memory_space<vmem>>, vector<8x128xf32>
      tpu.vector_store %arg6[%c0_15, %c0_16], %17 {strides = array<i32>} : memref<8x128xf32, #tpu.memory_space<vmem>>, vector<8x128xf32>,
    } else {
    }
    return
  }
  func.func @transform_0(%arg0: i32, %arg1: i32, %arg2: i32) -> (i32, i32) {
    %c0_i32 = arith.constant 0 : i32
    return %arg0, %arg2 : i32, i32
  }
  func.func @transform_1(%arg0: i32, %arg1: i32, %arg2: i32) -> (i32, i32) {
    %c0_i32 = arith.constant 0 : i32
    return %arg2, %arg1 : i32, i32
  }
  func.func @transform_2(%arg0: i32, %arg1: i32, %arg2: i32) -> (i32, i32) {
    %c0_i32 = arith.constant 0 : i32
    %c0_i32_0 = arith.constant 0 : i32
    return %c0_i32, %arg1 : i32, i32
  }
  func.func @transform_3(%arg0: i32, %arg1: i32, %arg2: i32) -> (i32, i32) {
    %c0_i32 = arith.constant 0 : i32
    return %arg0, %arg1 : i32, i32
  }
}

</mosaic_0001>

<bundles_post_ra>
// kernel: tpu_custom_call.1
= control target key start
LH: loop header
LB: loop body
LE: loop exit
PB: predicated region body
PF: predicated region fallthrough
CT: control target
= control target key end

     0   :  { %8 = vsyncpa [#allocation3], 0  ;;  %s331_s0 = inlined_call_operand.hbm [shape: f32[8,128], index: 0, kind: input, shape index: {}]   ;;  %s332_s1 = inlined_call_operand.hbm [shape: f32[128,128], index: 1, kind: input, shape index: {}]   ;;  %s333_s2 = inlined_call_operand.vmem [shape: f32[1,128], index: 2, kind: input, shape index: {}]   ;;  %s334_s3 = inlined_call_operand.hbm [shape: f32[8,128], index: 3, kind: output, shape index: {}]  }
   0x1   :  { %9 = vsyncpa [#allocation6], 0 }
   0x2   :  { %10 = vsyncpa [#allocation4], 0  ;;  %s292_s12 = smov [#allocation2]   ;;  %s293_s14 = smov [#allocation5]  }
   0x3   :  { %s17_s13 = sshll.u32 %s292_s12, 4  ;;  %s26_s15 = sshll.u32 %s293_s14, 4  ;;  %s18_s13 = int_to_ptr.vmem [resolvable:$true] %s17_s13  ;;  %s27_s15 = int_to_ptr.vmem [resolvable:$true] %s26_s15 }
   0x4   :  { %s234_s16 = scalar_lea.vmem %s18_s13, 128  ;;  %p239_p1 = scmp.lt.s32.totalorder %s18_s13, %s18_s13 }
   0x5   :  { %p235_p0 = scmp.ne.s32.totalorder %s18_s13, %s234_s16  ;;  %p240_p2 = scmp.lt.s32.totalorder %s234_s16, %s234_s16 }
   0x7   :  { %p241_p3 = por %p240_p2, %p239_p1 }
   0x9   :  { %p242_p4 = pnand %p241_p3, %p235_p0 }
   0xb   :  { %245 = shalt.err (!%p242_p4)
}
   0xc   :  { %20 = dma.hbm_to_vmem [thread:$0]  %s331_s0, 128, %s18_s13, [#allocation3]  }
   0xd   :  { %s254_s19 = scalar_lea.vmem %s27_s15, 2048  ;;  %p259_p6 = scmp.lt.s32.totalorder %s27_s15, %s27_s15 }
   0xe   :  { %p255_p5 = scmp.ne.s32.totalorder %s27_s15, %s254_s19  ;;  %p260_p7 = scmp.lt.s32.totalorder %s254_s19, %s254_s19 }
  0x10   :  { %p261_p8 = por %p260_p7, %p259_p6 }
  0x12   :  { %p262_p9 = pnand %p261_p8, %p255_p5 }
  0x14   :  { %265 = shalt.err (!%p262_p9)
}
  0x15   :  { %s294_s20 = smov 128   ;;  %s295_s21 = smov 8  }
  0x16   :  { %32 = dma.hbm_to_vmem [thread:$0]  %s332_s1, 2048, %s27_s15, [#allocation6], %s294_s20, %s294_s20, %s295_s21  }
  0x17   :  { %286 = dma.done.wait [#allocation3], 128  }
  0x18   :  { %287 = vsyncadd [#allocation3], 4294967168 }
  0x19   :  { %288 = dma.done.wait [#allocation6], 2048  }
  0x1a   :  { %289 = vsyncadd [#allocation6], 4294965248  ;;  %v296_v0 = vmov 0.0   ;;  %vm297_vm0 = vmmov 0   ;;  %v63_v1 = vld [vmem:[#allocation5 + $0x78] sm:$0xff]  ;;  %v62_v2 = vld [vmem:[#allocation5 + $0x70] sm:$0xff] }
  0x1b   :  { %184 = vmatprep.subr.mxu0 %v296_v0  ;;  %216 = vmatprep.mubr.msk.f32.mxu0 %vm297_vm0, %v296_v0  ;;  %v61_v3 = vld [vmem:[#allocation5 + $0x68] sm:$0xff]  ;;  %v60_v4 = vld [vmem:[#allocation5 + $0x60] sm:$0xff]  ;;  %v59_v5 = vld [vmem:[#allocation5 + $0x58] sm:$0xff]  ;;  %s298_s24 = smov [#allocation7]  }
  0x1c   :  { %185 = vmatpush3.msra.mxu0 %v63_v1  ;;  %v58_v6 = vld [vmem:[#allocation5 + $0x50] sm:$0xff]  ;;  %v57_v7 = vld [vmem:[#allocation5 + $0x48] sm:$0xff]  ;;  %v56_v8 = vld [vmem:[#allocation5 + $0x40] sm:$0xff]  ;;  %s156_s25 = sshll.u32 %s298_s24, 4  ;;  %s157_s25 = int_to_ptr.vmem [resolvable:$true] %s156_s25 }
  0x1d   :  { %186 = vmatprep.subr.mxu0 %v296_v0  ;;  %v55_v9 = vld [vmem:[#allocation5 + $0x38] sm:$0xff]  ;;  %v54_v10 = vld [vmem:[#allocation5 + $0x30] sm:$0xff]  ;;  %v53_v11 = vld [vmem:[#allocation5 + $0x28] sm:$0xff]  ;;  %s266_s26 = scalar_lea.vmem %s157_s25, 128  ;;  %p271_p11 = scmp.lt.s32.totalorder %s157_s25, %s157_s25 }
  0x1e   :  { %187 = vmatpush3.msra.mxu0 %v62_v2  ;;  %v52_v12 = vld [vmem:[#allocation5 + $0x20] sm:$0xff]  ;;  %v51_v13 = vld [vmem:[#allocation5 + $0x18] sm:$0xff]  ;;  %v50_v14 = vld [vmem:[#allocation5 + $0x10] sm:$0xff]  ;;  %p267_p10 = scmp.ne.s32.totalorder %s157_s25, %s266_s26  ;;  %p272_p12 = scmp.lt.s32.totalorder %s266_s26, %s266_s26 }
  0x1f   :  { %188 = vmatprep.subr.mxu0 %v296_v0  ;;  %v49_v15 = vld [vmem:[#allocation5 + $0x8] sm:$0xff]  ;;  %v48_v16 = vld [vmem:[#allocation5] sm:$0xff]  ;;  %v47_v17 = vld [vmem:[#allocation2] sm:$0xff] }
  0x20   :  { %189 = vmatpush3.msra.mxu0 %v61_v3  ;;  %v166_v19 = vld [vmem:[%s333_s2] ss:$0 sm:$0xff]  ;;  %p273_p13 = por %p272_p12, %p271_p11 }
  0x21   :  { %190 = vmatprep.subr.mxu0 %v296_v0 }
  0x22   :  { %191 = vmatpush3.msra.mxu0 %v60_v4  ;;  %p274_p0 = pnand %p273_p13, %p267_p10 }
  0x23   :  { %192 = vmatprep.subr.mxu0 %v296_v0 }
  0x24   :  { %193 = vmatpush3.msra.mxu0 %v59_v5 }
  0x25   :  { %194 = vmatprep.subr.mxu0 %v296_v0 }
  0x26   :  { %195 = vmatpush3.msra.mxu0 %v58_v6 }
  0x27   :  { %196 = vmatprep.subr.mxu0 %v296_v0 }
  0x28   :  { %197 = vmatpush3.msra.mxu0 %v57_v7 }
  0x29   :  { %198 = vmatprep.subr.mxu0 %v296_v0 }
  0x2a   :  { %199 = vmatpush3.msra.mxu0 %v56_v8 }
  0x2b   :  { %200 = vmatprep.subr.mxu0 %v296_v0 }
  0x2c   :  { %201 = vmatpush3.msra.mxu0 %v55_v9 }
  0x2d   :  { %202 = vmatprep.subr.mxu0 %v296_v0 }
  0x2e   :  { %203 = vmatpush3.msra.mxu0 %v54_v10 }
  0x2f   :  { %204 = vmatprep.subr.mxu0 %v296_v0 }
  0x30   :  { %205 = vmatpush3.msra.mxu0 %v53_v11 }
  0x31   :  { %206 = vmatprep.subr.mxu0 %v296_v0 }
  0x32   :  { %207 = vmatpush3.msra.mxu0 %v52_v12 }
  0x33   :  { %208 = vmatprep.subr.mxu0 %v296_v0 }
  0x34   :  { %209 = vmatpush3.msra.mxu0 %v51_v13 }
  0x35   :  { %210 = vmatprep.subr.mxu0 %v296_v0 }
  0x36   :  { %211 = vmatpush3.msra.mxu0 %v50_v14 }
  0x37   :  { %212 = vmatprep.subr.mxu0 %v296_v0 }
  0x38   :  { %213 = vmatpush3.msra.mxu0 %v49_v15 }
  0x39   :  { %214 = vmatprep.subr.mxu0 %v296_v0 }
  0x3a   :  { %215 = vmatpush3.msra.mxu0 %v48_v16 }
  0x3b   :  { %217 = vmatmul.mubr.f32.vlgmr.msra.gmra.mxu0 %v47_v17 }
  0xfb   :  { %v130_v18 = vpop.f32.mrf.mxu0 }
  0xfc   :  { %v147_v21 = vadd.f32 %v166_v19, %v130_v18 }
  0xfd   :  { %v218_v20 = vpop.f32.mrf.mxu0 }
  0xfe   :  { %v148_v22 = vmax.f32 %v147_v21, 0.0 }
 0x100   :  { %149 = vst [vmem:[#allocation7] sm:$0xff] %v148_v22 }
 0x101   :  { %277 = shalt.err (!%p274_p0)
}
 0x102   :  { %159 = dma.vmem_to_hbm [thread:$0]  %s157_s25, 128, %s334_s3, [#allocation4]  }
 0x103   :  { %290 = dma.done.wait [#allocation4], 128  }
 0x104   :  { %291 = vsyncadd [#allocation4], 4294967168 }
 0x105   :  { %163 = vsyncpa [#allocation3], 1 }
 0x106   :  { %164 = vsyncpa [#allocation6], 1 }
 0x107   :  { %165 = vsyncpa [#allocation4], 1 }

</bundles_post_ra>
